<compile_context>
chip_gen: v6e
topology: v6e:2x2x1
jax: 0.10.0
libtpu: 0.0.40
codegen_flags: <defaults>
</compile_context>

<pallas_src>
import math
import functools

import jax
import jax.numpy as jnp
from jax.experimental import pallas as pl
from jax.experimental.pallas import tpu as pltpu


def gat_kernel(roi_ref, adj_ref, lbias_ref,
               wqT_ref, bq_ref, wkT_ref, bk_ref, wcT_ref, bc_ref,
               out_ref, *, num_heads, dim_group):
    """One block of Bb batch elements per grid step. Everything fits in VMEM."""
    Bb, N, F = roi_ref.shape
    K = adj_ref.shape[-1]
    H, Dg = num_heads, dim_group

    roi = roi_ref[...].astype(jnp.bfloat16)                    # [Bb, N, F] bf16 MXU operand
    roi2 = roi.reshape(Bb * N, F)

    # Query projection for all Bb*N rows at once (1/sqrt(Dg) pre-folded into WqT/bq).
    q = jnp.dot(roi2, wqT_ref[...], preferred_element_type=jnp.float32) + bq_ref[0]
    q = q.reshape(Bb, N, F).astype(jnp.bfloat16)

    # Keys and v @ Wc^T on the first K rows of each batch element (v_data = nongt_roi_feat).
    v2 = roi[:, :K, :].reshape(Bb * K, F)
    k = jnp.dot(v2, wkT_ref[...], preferred_element_type=jnp.float32) + bk_ref[0]
    k = k.reshape(Bb, K, F).astype(jnp.bfloat16)
    vwc = jnp.dot(v2, wcT_ref[...], preferred_element_type=jnp.float32)
    vwc = vwc.reshape(Bb, K, F).astype(jnp.bfloat16)

    # Adjacency mask + label-bias addend: shared by every head, computed once (f32 VPU math).
    adj = adj_ref[...]
    edge = adj > 0
    maskf = edge.astype(jnp.float32)                           # [Bb, N, K]
    addend = jnp.where(edge, lbias_ref[...],
                       jnp.float32(-9e15) + lbias_ref[...])    # lbias on edges, -9e15+lbias off

    outs = []
    for h in range(H):                                         # static unroll over heads only
        lo = h * Dg
        # Affinity, batched over Bb in one einsum; contraction over Dg (no in-kernel transpose).
        aff = jnp.einsum('bnd,bkd->bnk',
                         q[:, :, lo:lo + Dg], k[:, :, lo:lo + Dg],
                         preferred_element_type=jnp.float32)   # [Bb, N, K]
        masked = aff * maskf + addend
        m = jnp.max(masked, axis=-1, keepdims=True)
        e = jnp.exp(masked - m)
        inv = pl.reciprocal(jnp.sum(e, axis=-1, keepdims=True), approx=True)
        p = (e * inv).astype(jnp.bfloat16)                     # [Bb, N, K]
        # Grouped 1x1 conv reassociated: (p @ v) @ Wc_h^T == p @ (v @ Wc^T)[:, h].
        outs.append(jnp.einsum('bnk,bkd->bnd', p, vwc[:, :, lo:lo + Dg],
                               preferred_element_type=jnp.float32))

    # Single lane-dense store: heads concatenated along lanes, conv bias added once at width F.
    out_ref[...] = (jnp.concatenate(outs, axis=-1) + bc_ref[0]).astype(out_ref.dtype)


def _pick_batch_block(B, N, F, K, target_rows=256, vmem_budget=8 << 20):
    """Largest divisor of B whose activation block stays inside a VMEM budget,
    stopping once the projection M dimension (Bb*N) is MXU-friendly."""
    per_b = 4 * N * (2 * F + 2 * K) * 2    # roi + out + adj + lbias, f32, double-buffered
    bb = 1
    for cand in range(1, B + 1):
        if B % cand:
            continue
        if cand * per_b > vmem_budget:
            break
        bb = cand
        if cand * N >= target_rows:
            break
    return bb


def graph_self_attention(roi_feat, adj_matrix, label_biases_att, params,
                         *, nongt_dim, num_heads):
    B, N, F = roi_feat.shape
    K = min(nongt_dim, N)
    assert F % num_heads == 0
    assert adj_matrix.shape == (B, N, K)
    dim_group = F // num_heads

    wq, bq, wk, bk, wc, bc = params
    scale = 1.0 / math.sqrt(float(dim_group))

    # One-off host-side weight prep: transpose, fold the affinity scale into Wq/bq,
    # cast MXU operands to bf16. Biases stay f32.
    wqT = (wq.T * scale).astype(jnp.bfloat16)              # [F, F]
    wkT = wk.T.astype(jnp.bfloat16)                        # [F, F]
    wcT = wc.T.astype(jnp.bfloat16)                        # [F, F]
    bq2 = (bq * scale).reshape(1, F).astype(jnp.float32)
    bk2 = bk.reshape(1, F).astype(jnp.float32)
    bc2 = bc.reshape(1, F).astype(jnp.float32)

    Bb = _pick_batch_block(B, N, F, K)
    grid = (B // Bb,)

    kernel = functools.partial(gat_kernel, num_heads=num_heads, dim_group=dim_group)

    # Rough VMEM estimate (double-buffered activation blocks + weights + in-body intermediates).
    est = (2 * 4 * Bb * N * (2 * F + 2 * K)        # pipelined blocks
           + 2 * (2 * 3 * F * F + 4 * 3 * F)       # bf16 weights + f32 biases (double-buffered)
           + 4 * Bb * N * F * 6)                   # q/k/vwc/concat-out style intermediates
    vmem_limit = int(min(64 << 20, max(16 << 20, 2 * est)))

    return pl.pallas_call(
        kernel,
        out_shape=jax.ShapeDtypeStruct((B, N, F), jnp.float32),
        grid=grid,
        in_specs=[
            pl.BlockSpec((Bb, N, F), lambda i: (i, 0, 0)),   # roi_feat (v sliced in-kernel)
            pl.BlockSpec((Bb, N, K), lambda i: (i, 0, 0)),   # adj_matrix
            pl.BlockSpec((Bb, N, K), lambda i: (i, 0, 0)),   # label_biases_att
            pl.BlockSpec((F, F), lambda i: (0, 0)),          # WqT (scaled, bf16)
            pl.BlockSpec((1, F), lambda i: (0, 0)),          # bq (scaled)
            pl.BlockSpec((F, F), lambda i: (0, 0)),          # WkT (bf16)
            pl.BlockSpec((1, F), lambda i: (0, 0)),          # bk
            pl.BlockSpec((F, F), lambda i: (0, 0)),          # WcT (bf16)
            pl.BlockSpec((1, F), lambda i: (0, 0)),          # bc
        ],
        out_specs=pl.BlockSpec((Bb, N, F), lambda i: (i, 0, 0)),
        compiler_params=pltpu.CompilerParams(
            dimension_semantics=("parallel",),
            vmem_limit_bytes=vmem_limit),
    )(roi_feat, adj_matrix, label_biases_att, wqT, bq2, wkT, bk2, wcT, bc2)


def reference(roi_feat, adj, lbias, params, *, nongt_dim, num_heads):
    """Pure-JAX f32 transcription of the PyTorch forward (eval mode)."""
    wq, bq, wk, bk, wc, bc = params
    B, N, F = roi_feat.shape
    K = min(nongt_dim, N)
    Dg = F // num_heads
    v = roi_feat[:, :K, :]
    q = roi_feat @ wq.T + bq
    k = v @ wk.T + bk
    qb = q.reshape(B, N, num_heads, Dg).transpose(0, 2, 1, 3)        # [B,H,N,Dg]
    kb = k.reshape(B, K, num_heads, Dg).transpose(0, 2, 1, 3)        # [B,H,K,Dg]
    aff = jnp.einsum('bhnd,bhkd->bhnk', qb, kb) / math.sqrt(float(Dg))
    aff = aff.transpose(0, 2, 1, 3)                                  # [B,N,H,K]
    wt = aff.transpose(0, 1, 3, 2)                                   # [B,N,K,H]
    masked = jnp.where(adj[..., None] > 0, wt, jnp.float32(-9e15)) + lbias[..., None]
    wa = masked.transpose(0, 1, 3, 2)                                # [B,N,H,K]
    p = jax.nn.softmax(wa, axis=3)
    out_t = jnp.einsum('bnhk,bkf->bnhf', p, v)                       # [B,N,H,F]
    outs = []
    for h in range(num_heads):
        outs.append(jnp.einsum('bnf,df->bnd', out_t[:, :, h, :],
                               wc[h * Dg:(h + 1) * Dg]) + bc[h * Dg:(h + 1) * Dg])
    return jnp.concatenate(outs, axis=-1)


if __name__ == "__main__":
    # Small, module-consistent shapes.
    B, N, F = 2, 8, 32
    num_heads = 4            # feat_dim must be divisible by num_heads
    nongt_dim = 20           # > N, so K = N = 8
    K = min(nongt_dim, N)

    key = jax.random.PRNGKey(0)
    k0, k1, k2, k3, k4, k5, k6, k7, k8 = jax.random.split(key, 9)

    roi_feat = jax.random.normal(k0, (B, N, F), dtype=jnp.float32)
    adj_matrix = (jax.random.uniform(k1, (B, N, K)) > 0.4).astype(jnp.float32)
    label_biases_att = 0.1 * jax.random.normal(k2, (B, N, K), dtype=jnp.float32)

    # Deterministic synthetic parameters (weight_norm folded into plain weights).
    wq = 0.1 * jax.random.normal(k3, (F, F), dtype=jnp.float32)
    bq = 0.05 * jax.random.normal(k4, (F,), dtype=jnp.float32)
    wk = 0.1 * jax.random.normal(k5, (F, F), dtype=jnp.float32)
    bk = 0.05 * jax.random.normal(k6, (F,), dtype=jnp.float32)
    wc = 0.1 * jax.random.normal(k7, (F, F), dtype=jnp.float32)   # conv weight [F, F, 1, 1] -> [F, F]
    bc = 0.05 * jax.random.normal(k8, (F,), dtype=jnp.float32)
    params = (wq, bq, wk, bk, wc, bc)

    out = graph_self_attention(roi_feat, adj_matrix, label_biases_att, params,
                               nongt_dim=nongt_dim, num_heads=num_heads)
    out = jax.block_until_ready(out)

    ref = reference(roi_feat, adj_matrix, label_biases_att, params,
                    nongt_dim=nongt_dim, num_heads=num_heads)
    # bf16 MXU operands + reassociated grouped conv + approx reciprocal => looser tolerance
    if not jnp.allclose(out, ref, atol=2e-2, rtol=2e-2):
        raise AssertionError("Pallas output does not match reference")

    print("KERNEL_OK")
</pallas_src>

<mosaic_0001>
module attributes {stable_mosaic.version = 11 : i64} {
  func.func @gat_kernel(%arg0: i32, %arg1: memref<2x8x32xf32, #tpu.memory_space<vmem>>, %arg2: memref<2x8x8xf32, #tpu.memory_space<vmem>>, %arg3: memref<2x8x8xf32, #tpu.memory_space<vmem>>, %arg4: memref<32x32xbf16, #tpu.memory_space<vmem>>, %arg5: memref<1x32xf32, #tpu.memory_space<vmem>>, %arg6: memref<32x32xbf16, #tpu.memory_space<vmem>>, %arg7: memref<1x32xf32, #tpu.memory_space<vmem>>, %arg8: memref<32x32xbf16, #tpu.memory_space<vmem>>, %arg9: memref<1x32xf32, #tpu.memory_space<vmem>>, %arg10: memref<2x8x32xf32, #tpu.memory_space<vmem>>) attributes {dimension_semantics = [#tpu.dimension_semantics<parallel>], iteration_bounds = array<i64: 1>, scalar_prefetch = 0 : i64, scratch_operands = 0 : i64, tpu.core_type = #tpu.core_type<tc>, window_params = [{transform_indices = @transform_0, window_bounds = array<i64: 2, 8, 32>}, {transform_indices = @transform_1, window_bounds = array<i64: 2, 8, 8>}, {transform_indices = @transform_2, window_bounds = array<i64: 2, 8, 8>}, {pipeline_mode = #tpu.pipeline_mode<synchronous>, transform_indices = @transform_3, window_bounds = array<i64: 32, 32>}, {pipeline_mode = #tpu.pipeline_mode<synchronous>, transform_indices = @transform_4, window_bounds = array<i64: 1, 32>}, {pipeline_mode = #tpu.pipeline_mode<synchronous>, transform_indices = @transform_5, window_bounds = array<i64: 32, 32>}, {pipeline_mode = #tpu.pipeline_mode<synchronous>, transform_indices = @transform_6, window_bounds = array<i64: 1, 32>}, {pipeline_mode = #tpu.pipeline_mode<synchronous>, transform_indices = @transform_7, window_bounds = array<i64: 32, 32>}, {pipeline_mode = #tpu.pipeline_mode<synchronous>, transform_indices = @transform_8, window_bounds = array<i64: 1, 32>}, {transform_indices = @transform_9, window_bounds = array<i64: 2, 8, 32>}]} {
    %c0 = arith.constant 0 : index
    %c0_0 = arith.constant 0 : index
    %c0_1 = arith.constant 0 : index
    %0 = vector.load %arg1[%c0, %c0_0, %c0_1] : memref<2x8x32xf32, #tpu.memory_space<vmem>>, vector<2x8x32xf32>
    %1 = arith.truncf %0 : vector<2x8x32xf32> to vector<2x8x32xbf16>
    %2 = vector.shape_cast %1 : vector<2x8x32xbf16> to vector<16x32xbf16>
    %c0_2 = arith.constant 0 : index
    %c0_3 = arith.constant 0 : index
    %3 = vector.load %arg4[%c0_2, %c0_3] : memref<32x32xbf16, #tpu.memory_space<vmem>>, vector<32x32xbf16>
    %cst = arith.constant dense<0.000000e+00> : vector<16x32xf32>
    %4 = tpu.matmul %2, %3, %cst {dimension_numbers = #tpu.dot_dimension_numbers<[1], [0], [0], [1], [0, 0, 1, 1], [], []>} : vector<16x32xbf16>, vector<32x32xbf16>, vector<16x32xf32> -> vector<16x32xf32>
    %c0_4 = arith.constant 0 : index
    %c0_5 = arith.constant 0 : index
    %5 = vector.load %arg5[%c0_4, %c0_5] : memref<1x32xf32, #tpu.memory_space<vmem>>, vector<1x32xf32>
    %6 = vector.shape_cast %5 : vector<1x32xf32> to vector<32xf32>
    %7 = vector.shape_cast %6 : vector<32xf32> to vector<1x32xf32>
    %8 = vector.broadcast %7 : vector<1x32xf32> to vector<16x32xf32>
    %9 = arith.addf %4, %8 : vector<16x32xf32>
    %10 = vector.shape_cast %9 : vector<16x32xf32> to vector<2x8x32xf32>
    %11 = arith.truncf %10 : vector<2x8x32xf32> to vector<2x8x32xbf16>
    %12 = vector.shape_cast %1 : vector<2x8x32xbf16> to vector<16x32xbf16>
    %c0_6 = arith.constant 0 : index
    %c0_7 = arith.constant 0 : index
    %13 = vector.load %arg6[%c0_6, %c0_7] : memref<32x32xbf16, #tpu.memory_space<vmem>>, vector<32x32xbf16>
    %cst_8 = arith.constant dense<0.000000e+00> : vector<16x32xf32>
    %14 = tpu.matmul %12, %13, %cst_8 {dimension_numbers = #tpu.dot_dimension_numbers<[1], [0], [0], [1], [0, 0, 1, 1], [], []>} : vector<16x32xbf16>, vector<32x32xbf16>, vector<16x32xf32> -> vector<16x32xf32>
    %c0_9 = arith.constant 0 : index
    %c0_10 = arith.constant 0 : index
    %15 = vector.load %arg7[%c0_9, %c0_10] : memref<1x32xf32, #tpu.memory_space<vmem>>, vector<1x32xf32>
    %16 = vector.shape_cast %15 : vector<1x32xf32> to vector<32xf32>
    %17 = vector.shape_cast %16 : vector<32xf32> to vector<1x32xf32>
    %18 = vector.broadcast %17 : vector<1x32xf32> to vector<16x32xf32>
    %19 = arith.addf %14, %18 : vector<16x32xf32>
    %20 = vector.shape_cast %19 : vector<16x32xf32> to vector<2x8x32xf32>
    %21 = arith.truncf %20 : vector<2x8x32xf32> to vector<2x8x32xbf16>
    %c0_11 = arith.constant 0 : index
    %c0_12 = arith.constant 0 : index
    %22 = vector.load %arg8[%c0_11, %c0_12] : memref<32x32xbf16, #tpu.memory_space<vmem>>, vector<32x32xbf16>
    %cst_13 = arith.constant dense<0.000000e+00> : vector<16x32xf32>
    %23 = tpu.matmul %12, %22, %cst_13 {dimension_numbers = #tpu.dot_dimension_numbers<[1], [0], [0], [1], [0, 0, 1, 1], [], []>} : vector<16x32xbf16>, vector<32x32xbf16>, vector<16x32xf32> -> vector<16x32xf32>
    %24 = vector.shape_cast %23 : vector<16x32xf32> to vector<2x8x32xf32>
    %25 = arith.truncf %24 : vector<2x8x32xf32> to vector<2x8x32xbf16>
    %c0_14 = arith.constant 0 : index
    %c0_15 = arith.constant 0 : index
    %c0_16 = arith.constant 0 : index
    %26 = vector.load %arg2[%c0_14, %c0_15, %c0_16] : memref<2x8x8xf32, #tpu.memory_space<vmem>>, vector<2x8x8xf32>
    %cst_17 = arith.constant 0.000000e+00 : f32
    %27 = vector.broadcast %cst_17 : f32 to vector<2x8x8xf32>
    %28 = arith.cmpf ogt, %26, %27 : vector<2x8x8xf32>
    %29 = arith.extui %28 : vector<2x8x8xi1> to vector<2x8x8xi32>
    %30 = arith.sitofp %29 : vector<2x8x8xi32> to vector<2x8x8xf32>
    %c0_18 = arith.constant 0 : index
    %c0_19 = arith.constant 0 : index
    %c0_20 = arith.constant 0 : index
    %31 = vector.load %arg3[%c0_18, %c0_19, %c0_20] : memref<2x8x8xf32, #tpu.memory_space<vmem>>, vector<2x8x8xf32>
    %c0_21 = arith.constant 0 : index
    %c0_22 = arith.constant 0 : index
    %c0_23 = arith.constant 0 : index
    %32 = vector.load %arg3[%c0_21, %c0_22, %c0_23] : memref<2x8x8xf32, #tpu.memory_space<vmem>>, vector<2x8x8xf32>
    %cst_24 = arith.constant -9.000000e+15 : f32
    %33 = vector.broadcast %cst_24 : f32 to vector<2x8x8xf32>
    %34 = arith.addf %33, %32 : vector<2x8x8xf32>
    %35 = arith.select %28, %31, %34 : vector<2x8x8xi1>, vector<2x8x8xf32>
    %36 = vector.extract_strided_slice %11 {offsets = [0, 0, 0], sizes = [2, 8, 8], strides = [1, 1, 1]} : vector<2x8x32xbf16> to vector<2x8x8xbf16>
    %37 = vector.extract_strided_slice %21 {offsets = [0, 0, 0], sizes = [2, 8, 8], strides = [1, 1, 1]} : vector<2x8x32xbf16> to vector<2x8x8xbf16>
    "tpu.trace_start"() <{level = 10 : i32, message = "bnd,bkd->bnk"}> : () -> ()
    %cst_25 = arith.constant dense<0.000000e+00> : vector<2x8x8xf32>
    %38 = tpu.matmul %36, %37, %cst_25 {dimension_numbers = #tpu.dot_dimension_numbers<[2], [2], [1], [1], [0, 0, 0, 1, 1, 1], [0], [0]>} : vector<2x8x8xbf16>, vector<2x8x8xbf16>, vector<2x8x8xf32> -> vector<2x8x8xf32>
    "tpu.trace_stop"() : () -> ()
    %39 = arith.mulf %38, %30 : vector<2x8x8xf32>
    %40 = arith.addf %39, %35 : vector<2x8x8xf32>
    %cst_26 = arith.constant dense<0xFF800000> : vector<2x8xf32>
    %41 = vector.multi_reduction <maximumf>, %40, %cst_26 [2] : vector<2x8x8xf32> to vector<2x8xf32>
    %42 = vector.shape_cast %41 : vector<2x8xf32> to vector<2x8x1xf32>
    %43 = vector.broadcast %42 : vector<2x8x1xf32> to vector<2x8x8xf32>
    %44 = arith.subf %40, %43 : vector<2x8x8xf32>
    %45 = math.exp %44 : vector<2x8x8xf32>
    %cst_27 = arith.constant dense<0.000000e+00> : vector<2x8xf32>
    %46 = vector.multi_reduction <add>, %45, %cst_27 [2] : vector<2x8x8xf32> to vector<2x8xf32>
    %47 = vector.shape_cast %46 : vector<2x8xf32> to vector<2x8x1xf32>
    %48 = tpu.reciprocal %47 {approx = true} : vector<2x8x1xf32> -> vector<2x8x1xf32>
    %49 = vector.broadcast %48 : vector<2x8x1xf32> to vector<2x8x8xf32>
    %50 = arith.mulf %45, %49 : vector<2x8x8xf32>
    %51 = arith.truncf %50 : vector<2x8x8xf32> to vector<2x8x8xbf16>
    %52 = vector.extract_strided_slice %25 {offsets = [0, 0, 0], sizes = [2, 8, 8], strides = [1, 1, 1]} : vector<2x8x32xbf16> to vector<2x8x8xbf16>
    "tpu.trace_start"() <{level = 10 : i32, message = "bnk,bkd->bnd"}> : () -> ()
    %cst_28 = arith.constant dense<0.000000e+00> : vector<2x8x8xf32>
    %53 = tpu.matmul %51, %52, %cst_28 {dimension_numbers = #tpu.dot_dimension_numbers<[2], [1], [1], [2], [0, 0, 0, 1, 1, 2], [0], [0]>} : vector<2x8x8xbf16>, vector<2x8x8xbf16>, vector<2x8x8xf32> -> vector<2x8x8xf32>
    "tpu.trace_stop"() : () -> ()
    %54 = vector.extract_strided_slice %11 {offsets = [0, 0, 8], sizes = [2, 8, 8], strides = [1, 1, 1]} : vector<2x8x32xbf16> to vector<2x8x8xbf16>
    %55 = vector.extract_strided_slice %21 {offsets = [0, 0, 8], sizes = [2, 8, 8], strides = [1, 1, 1]} : vector<2x8x32xbf16> to vector<2x8x8xbf16>
    "tpu.trace_start"() <{level = 10 : i32, message = "bnd,bkd->bnk"}> : () -> ()
    %cst_29 = arith.constant dense<0.000000e+00> : vector<2x8x8xf32>
    %56 = tpu.matmul %54, %55, %cst_29 {dimension_numbers = #tpu.dot_dimension_numbers<[2], [2], [1], [1], [0, 0, 0, 1, 1, 1], [0], [0]>} : vector<2x8x8xbf16>, vector<2x8x8xbf16>, vector<2x8x8xf32> -> vector<2x8x8xf32>
    "tpu.trace_stop"() : () -> ()
    %57 = arith.mulf %56, %30 : vector<2x8x8xf32>
    %58 = arith.addf %57, %35 : vector<2x8x8xf32>
    %cst_30 = arith.constant dense<0xFF800000> : vector<2x8xf32>
    %59 = vector.multi_reduction <maximumf>, %58, %cst_30 [2] : vector<2x8x8xf32> to vector<2x8xf32>
    %60 = vector.shape_cast %59 : vector<2x8xf32> to vector<2x8x1xf32>
    %61 = vector.broadcast %60 : vector<2x8x1xf32> to vector<2x8x8xf32>
    %62 = arith.subf %58, %61 : vector<2x8x8xf32>
    %63 = math.exp %62 : vector<2x8x8xf32>
    %cst_31 = arith.constant dense<0.000000e+00> : vector<2x8xf32>
    %64 = vector.multi_reduction <add>, %63, %cst_31 [2] : vector<2x8x8xf32> to vector<2x8xf32>
    %65 = vector.shape_cast %64 : vector<2x8xf32> to vector<2x8x1xf32>
    %66 = tpu.reciprocal %65 {approx = true} : vector<2x8x1xf32> -> vector<2x8x1xf32>
    %67 = vector.broadcast %66 : vector<2x8x1xf32> to vector<2x8x8xf32>
    %68 = arith.mulf %63, %67 : vector<2x8x8xf32>
    %69 = arith.truncf %68 : vector<2x8x8xf32> to vector<2x8x8xbf16>
    %70 = vector.extract_strided_slice %25 {offsets = [0, 0, 8], sizes = [2, 8, 8], strides = [1, 1, 1]} : vector<2x8x32xbf16> to vector<2x8x8xbf16>
    "tpu.trace_start"() <{level = 10 : i32, message = "bnk,bkd->bnd"}> : () -> ()
    %cst_32 = arith.constant dense<0.000000e+00> : vector<2x8x8xf32>
    %71 = tpu.matmul %69, %70, %cst_32 {dimension_numbers = #tpu.dot_dimension_numbers<[2], [1], [1], [2], [0, 0, 0, 1, 1, 2], [0], [0]>} : vector<2x8x8xbf16>, vector<2x8x8xbf16>, vector<2x8x8xf32> -> vector<2x8x8xf32>
    "tpu.trace_stop"() : () -> ()
    %72 = vector.extract_strided_slice %11 {offsets = [0, 0, 16], sizes = [2, 8, 8], strides = [1, 1, 1]} : vector<2x8x32xbf16> to vector<2x8x8xbf16>
    %73 = vector.extract_strided_slice %21 {offsets = [0, 0, 16], sizes = [2, 8, 8], strides = [1, 1, 1]} : vector<2x8x32xbf16> to vector<2x8x8xbf16>
    "tpu.trace_start"() <{level = 10 : i32, message = "bnd,bkd->bnk"}> : () -> ()
    %cst_33 = arith.constant dense<0.000000e+00> : vector<2x8x8xf32>
    %74 = tpu.matmul %72, %73, %cst_33 {dimension_numbers = #tpu.dot_dimension_numbers<[2], [2], [1], [1], [0, 0, 0, 1, 1, 1], [0], [0]>} : vector<2x8x8xbf16>, vector<2x8x8xbf16>, vector<2x8x8xf32> -> vector<2x8x8xf32>
    "tpu.trace_stop"() : () -> ()
    %75 = arith.mulf %74, %30 : vector<2x8x8xf32>
    %76 = arith.addf %75, %35 : vector<2x8x8xf32>
    %cst_34 = arith.constant dense<0xFF800000> : vector<2x8xf32>
    %77 = vector.multi_reduction <maximumf>, %76, %cst_34 [2] : vector<2x8x8xf32> to vector<2x8xf32>
    %78 = vector.shape_cast %77 : vector<2x8xf32> to vector<2x8x1xf32>
    %79 = vector.broadcast %78 : vector<2x8x1xf32> to vector<2x8x8xf32>
    %80 = arith.subf %76, %79 : vector<2x8x8xf32>
    %81 = math.exp %80 : vector<2x8x8xf32>
    %cst_35 = arith.constant dense<0.000000e+00> : vector<2x8xf32>
    %82 = vector.multi_reduction <add>, %81, %cst_35 [2] : vector<2x8x8xf32> to vector<2x8xf32>
    %83 = vector.shape_cast %82 : vector<2x8xf32> to vector<2x8x1xf32>
    %84 = tpu.reciprocal %83 {approx = true} : vector<2x8x1xf32> -> vector<2x8x1xf32>
    %85 = vector.broadcast %84 : vector<2x8x1xf32> to vector<2x8x8xf32>
    %86 = arith.mulf %81, %85 : vector<2x8x8xf32>
    %87 = arith.truncf %86 : vector<2x8x8xf32> to vector<2x8x8xbf16>
    %88 = vector.extract_strided_slice %25 {offsets = [0, 0, 16], sizes = [2, 8, 8], strides = [1, 1, 1]} : vector<2x8x32xbf16> to vector<2x8x8xbf16>
    "tpu.trace_start"() <{level = 10 : i32, message = "bnk,bkd->bnd"}> : () -> ()
    %cst_36 = arith.constant dense<0.000000e+00> : vector<2x8x8xf32>
    %89 = tpu.matmul %87, %88, %cst_36 {dimension_numbers = #tpu.dot_dimension_numbers<[2], [1], [1], [2], [0, 0, 0, 1, 1, 2], [0], [0]>} : vector<2x8x8xbf16>, vector<2x8x8xbf16>, vector<2x8x8xf32> -> vector<2x8x8xf32>
    "tpu.trace_stop"() : () -> ()
    %90 = vector.extract_strided_slice %11 {offsets = [0, 0, 24], sizes = [2, 8, 8], strides = [1, 1, 1]} : vector<2x8x32xbf16> to vector<2x8x8xbf16>
    %91 = vector.extract_strided_slice %21 {offsets = [0, 0, 24], sizes = [2, 8, 8], strides = [1, 1, 1]} : vector<2x8x32xbf16> to vector<2x8x8xbf16>
    "tpu.trace_start"() <{level = 10 : i32, message = "bnd,bkd->bnk"}> : () -> ()
    %cst_37 = arith.constant dense<0.000000e+00> : vector<2x8x8xf32>
    %92 = tpu.matmul %90, %91, %cst_37 {dimension_numbers = #tpu.dot_dimension_numbers<[2], [2], [1], [1], [0, 0, 0, 1, 1, 1], [0], [0]>} : vector<2x8x8xbf16>, vector<2x8x8xbf16>, vector<2x8x8xf32> -> vector<2x8x8xf32>
    "tpu.trace_stop"() : () -> ()
    %93 = arith.mulf %92, %30 : vector<2x8x8xf32>
    %94 = arith.addf %93, %35 : vector<2x8x8xf32>
    %cst_38 = arith.constant dense<0xFF800000> : vector<2x8xf32>
    %95 = vector.multi_reduction <maximumf>, %94, %cst_38 [2] : vector<2x8x8xf32> to vector<2x8xf32>
    %96 = vector.shape_cast %95 : vector<2x8xf32> to vector<2x8x1xf32>
    %97 = vector.broadcast %96 : vector<2x8x1xf32> to vector<2x8x8xf32>
    %98 = arith.subf %94, %97 : vector<2x8x8xf32>
    %99 = math.exp %98 : vector<2x8x8xf32>
    %cst_39 = arith.constant dense<0.000000e+00> : vector<2x8xf32>
    %100 = vector.multi_reduction <add>, %99, %cst_39 [2] : vector<2x8x8xf32> to vector<2x8xf32>
    %101 = vector.shape_cast %100 : vector<2x8xf32> to vector<2x8x1xf32>
    %102 = tpu.reciprocal %101 {approx = true} : vector<2x8x1xf32> -> vector<2x8x1xf32>
    %103 = vector.broadcast %102 : vector<2x8x1xf32> to vector<2x8x8xf32>
    %104 = arith.mulf %99, %103 : vector<2x8x8xf32>
    %105 = arith.truncf %104 : vector<2x8x8xf32> to vector<2x8x8xbf16>
    %106 = vector.extract_strided_slice %25 {offsets = [0, 0, 24], sizes = [2, 8, 8], strides = [1, 1, 1]} : vector<2x8x32xbf16> to vector<2x8x8xbf16>
    "tpu.trace_start"() <{level = 10 : i32, message = "bnk,bkd->bnd"}> : () -> ()
    %cst_40 = arith.constant dense<0.000000e+00> : vector<2x8x8xf32>
    %107 = tpu.matmul %105, %106, %cst_40 {dimension_numbers = #tpu.dot_dimension_numbers<[2], [1], [1], [2], [0, 0, 0, 1, 1, 2], [0], [0]>} : vector<2x8x8xbf16>, vector<2x8x8xbf16>, vector<2x8x8xf32> -> vector<2x8x8xf32>
    "tpu.trace_stop"() : () -> ()
    %108 = tpu.concatenate %53, %71, %89, %107 in 2 : vector<2x8x8xf32>, vector<2x8x8xf32>, vector<2x8x8xf32>, vector<2x8x8xf32> -> vector<2x8x32xf32>
    %c0_41 = arith.constant 0 : index
    %c0_42 = arith.constant 0 : index
    %109 = vector.load %arg9[%c0_41, %c0_42] : memref<1x32xf32, #tpu.memory_space<vmem>>, vector<1x32xf32>
    %110 = vector.shape_cast %109 : vector<1x32xf32> to vector<32xf32>
    %111 = vector.shape_cast %110 : vector<32xf32> to vector<1x1x32xf32>
    %112 = vector.broadcast %111 : vector<1x1x32xf32> to vector<2x8x32xf32>
    %113 = arith.addf %108, %112 : vector<2x8x32xf32>
    %c0_43 = arith.constant 0 : index
    %c0_44 = arith.constant 0 : index
    %c0_45 = arith.constant 0 : index
    %114 = vector.load %arg10[%c0_43, %c0_44, %c0_45] : memref<2x8x32xf32, #tpu.memory_space<vmem>>, vector<2x8x32xf32>
    tpu.vector_store %arg10[%c0_43, %c0_44, %c0_45], %113 {strides = array<i32>} : memref<2x8x32xf32, #tpu.memory_space<vmem>>, vector<2x8x32xf32>,
    return
  }
  func.func @transform_0(%arg0: i32) -> (i32, i32, i32) {
    %c0_i32 = arith.constant 0 : i32
    %c0_i32_0 = arith.constant 0 : i32
    %c0_i32_1 = arith.constant 0 : i32
    return %arg0, %c0_i32, %c0_i32_0 : i32, i32, i32
  }
  func.func @transform_1(%arg0: i32) -> (i32, i32, i32) {
    %c0_i32 = arith.constant 0 : i32
    %c0_i32_0 = arith.constant 0 : i32
    %c0_i32_1 = arith.constant 0 : i32
    return %arg0, %c0_i32, %c0_i32_0 : i32, i32, i32
  }
  func.func @transform_2(%arg0: i32) -> (i32, i32, i32) {
    %c0_i32 = arith.constant 0 : i32
    %c0_i32_0 = arith.constant 0 : i32
    %c0_i32_1 = arith.constant 0 : i32
    return %arg0, %c0_i32, %c0_i32_0 : i32, i32, i32
  }
  func.func @transform_3(%arg0: i32) -> (i32, i32) {
    %c0_i32 = arith.constant 0 : i32
    %c0_i32_0 = arith.constant 0 : i32
    %c0_i32_1 = arith.constant 0 : i32
    return %c0_i32, %c0_i32_0 : i32, i32
  }
  func.func @transform_4(%arg0: i32) -> (i32, i32) {
    %c0_i32 = arith.constant 0 : i32
    %c0_i32_0 = arith.constant 0 : i32
    %c0_i32_1 = arith.constant 0 : i32
    return %c0_i32, %c0_i32_0 : i32, i32
  }
  func.func @transform_5(%arg0: i32) -> (i32, i32) {
    %c0_i32 = arith.constant 0 : i32
    %c0_i32_0 = arith.constant 0 : i32
    %c0_i32_1 = arith.constant 0 : i32
    return %c0_i32, %c0_i32_0 : i32, i32
  }
  func.func @transform_6(%arg0: i32) -> (i32, i32) {
    %c0_i32 = arith.constant 0 : i32
    %c0_i32_0 = arith.constant 0 : i32
    %c0_i32_1 = arith.constant 0 : i32
    return %c0_i32, %c0_i32_0 : i32, i32
  }
  func.func @transform_7(%arg0: i32) -> (i32, i32) {
    %c0_i32 = arith.constant 0 : i32
    %c0_i32_0 = arith.constant 0 : i32
    %c0_i32_1 = arith.constant 0 : i32
    return %c0_i32, %c0_i32_0 : i32, i32
  }
  func.func @transform_8(%arg0: i32) -> (i32, i32) {
    %c0_i32 = arith.constant 0 : i32
    %c0_i32_0 = arith.constant 0 : i32
    %c0_i32_1 = arith.constant 0 : i32
    return %c0_i32, %c0_i32_0 : i32, i32
  }
  func.func @transform_9(%arg0: i32) -> (i32, i32, i32) {
    %c0_i32 = arith.constant 0 : i32
    %c0_i32_0 = arith.constant 0 : i32
    %c0_i32_1 = arith.constant 0 : i32
    return %arg0, %c0_i32, %c0_i32_0 : i32, i32, i32
  }
}

</mosaic_0001>

<bundles_post_ra>
// kernel: tpu_custom_call.1
= control target key start
LH: loop header
LB: loop body
LE: loop exit
PB: predicated region body
PF: predicated region fallthrough
CT: control target
= control target key end

     0   :  { %14 = vsyncpa [#allocation3], 0  ;;  %s2016_s0 = inlined_call_operand.hbm [shape: f32[2,8,32], index: 0, kind: input, shape index: {}]   ;;  %s2017_s1 = inlined_call_operand.hbm [shape: f32[2,8,8], index: 1, kind: input, shape index: {}]   ;;  %s2018_s2 = inlined_call_operand.hbm [shape: f32[2,8,8], index: 2, kind: input, shape index: {}]   ;;  %s2019_s3 = inlined_call_operand.hbm [shape: bf16[32,32], index: 3, kind: input, shape index: {}]   ;;  %s2020_s4 = inlined_call_operand.vmem [shape: f32[1,32], index: 4, kind: input, shape index: {}]   ;;  %s2021_s5 = inlined_call_operand.hbm [shape: bf16[32,32], index: 5, kind: input, shape index: {}]   ;;  %s2022_s6 = inlined_call_operand.vmem [shape: f32[1,32], index: 6, kind: input, shape index: {}]   ;;  %s2023_s7 = inlined_call_operand.hbm [shape: bf16[32,32], index: 7, kind: input, shape index: {}]   ;;  %s2024_s8 = inlined_call_operand.vmem [shape: f32[1,32], index: 8, kind: input, shape index: {}]   ;;  %s2025_s9 = inlined_call_operand.hbm [shape: f32[2,8,32], index: 9, kind: output, shape index: {}]  }
   0x1   :  { %15 = vsyncpa [#allocation6], 0 }
   0x2   :  { %16 = vsyncpa [#allocation9], 0 }
   0x3   :  { %17 = vsyncpa [#allocation12], 0 }
   0x4   :  { %18 = vsyncpa [#allocation4], 0  ;;  %s1688_s30 = smov [#allocation5]   ;;  %s1689_s11 = smov [#allocation8]  }
   0x5   :  { %s36_s10 = sshll.u32 %s1688_s30, 4  ;;  %s60_s12 = sshll.u32 %s1689_s11, 4  ;;  %s37_s10 = int_to_ptr.vmem [resolvable:$true] %s36_s10  ;;  %s61_s12 = int_to_ptr.vmem [resolvable:$true] %s60_s12 }
   0x6   :  { %s1546_s13 = scalar_lea.vmem %s37_s10, 256  ;;  %p1551_p1 = scmp.lt.s32.totalorder %s37_s10, %s37_s10 }
   0x7   :  { %p1547_p0 = scmp.ne.s32.totalorder %s37_s10, %s1546_s13  ;;  %p1552_p2 = scmp.lt.s32.totalorder %s1546_s13, %s1546_s13 }
   0x9   :  { %p1553_p3 = por %p1552_p2, %p1551_p1 }
   0xb   :  { %p1554_p4 = pnand %p1553_p3, %p1547_p0 }
   0xd   :  { %1557 = shalt.err (!%p1554_p4)
}
   0xe   :  { %s1690_s14 = smov 128   ;;  %s1691_s15 = smov 8  }
   0xf   :  { %42 = dma.hbm_to_vmem [thread:$0]  %s2017_s1, 256, %s37_s10, [#allocation6], %s1690_s14, %s1690_s14, %s1691_s15  }
  0x10   :  { %s1566_s18 = scalar_lea.vmem %s61_s12, 256  ;;  %p1571_p6 = scmp.lt.s32.totalorder %s61_s12, %s61_s12 }
  0x11   :  { %p1567_p5 = scmp.ne.s32.totalorder %s61_s12, %s1566_s18  ;;  %p1572_p7 = scmp.lt.s32.totalorder %s1566_s18, %s1566_s18 }
  0x13   :  { %p1573_p8 = por %p1572_p7, %p1571_p6 }
  0x15   :  { %p1574_p9 = pnand %p1573_p8, %p1567_p5 }
  0x17   :  { %1577 = shalt.err (!%p1574_p9)
}
  0x18   :  { %s1692_s19 = smov 64   ;;  %s1693_s20 = smov 4  }
  0x19   :  { %66 = dma.hbm_to_vmem [thread:$0]  %s2019_s3, 256, %s61_s12, [#allocation9], %s1692_s19, %s1692_s19, %s1693_s20  }
  0x1a   :  { %s1694_s23 = smov [#allocation2]   ;;  %s1695_s25 = smov [#allocation7]  }
  0x1b   :  { %s24_s24 = sshll.u32 %s1694_s23, 4  ;;  %s48_s1 = sshll.u32 %s1695_s25, 4  ;;  %s25_s24 = int_to_ptr.vmem [resolvable:$true] %s24_s24  ;;  %s49_s1 = int_to_ptr.vmem [resolvable:$true] %s48_s1 }
  0x1c   :  { %s1586_s26 = scalar_lea.vmem %s25_s24, 256  ;;  %p1591_p11 = scmp.lt.s32.totalorder %s25_s24, %s25_s24 }
  0x1d   :  { %p1587_p10 = scmp.ne.s32.totalorder %s25_s24, %s1586_s26  ;;  %p1592_p12 = scmp.lt.s32.totalorder %s1586_s26, %s1586_s26 }
  0x1f   :  { %p1593_p13 = por %p1592_p12, %p1591_p11 }
  0x21   :  { %p1594_p0 = pnand %p1593_p13, %p1587_p10 }
  0x23   :  { %1597 = shalt.err (!%p1594_p0)
}
  0x24   :  { %30 = dma.hbm_to_vmem [thread:$0]  %s2016_s0, 256, %s25_s24, [#allocation3], %s1690_s14, %s1690_s14, %s1691_s15  }
  0x25   :  { %s1606_s3 = scalar_lea.vmem %s49_s1, 256  ;;  %p1611_p2 = scmp.lt.s32.totalorder %s49_s1, %s49_s1 }
  0x26   :  { %p1607_p1 = scmp.ne.s32.totalorder %s49_s1, %s1606_s3  ;;  %p1612_p3 = scmp.lt.s32.totalorder %s1606_s3, %s1606_s3 }
  0x28   :  { %p1613_p4 = por %p1612_p3, %p1611_p2 }
  0x2a   :  { %p1614_p5 = pnand %p1613_p4, %p1607_p1 }
  0x2c   :  { %1617 = shalt.err (!%p1614_p5)
}
  0x2d   :  { %54 = dma.hbm_to_vmem [thread:$0]  %s2018_s2, 256, %s49_s1, [#allocation6], %s1690_s14, %s1690_s14, %s1691_s15  }
  0x2e   :  { %s1696_s10 = smov [#allocation10]   ;;  %s1697_s12 = smov [#allocation11]  }
  0x2f   :  { %s74_s11 = sshll.u32 %s1696_s10, 4  ;;  %s88_s13 = sshll.u32 %s1697_s12, 4  ;;  %s75_s11 = int_to_ptr.vmem [resolvable:$true] %s74_s11  ;;  %s89_s13 = int_to_ptr.vmem [resolvable:$true] %s88_s13 }
  0x30   :  { %s1626_s0 = scalar_lea.vmem %s75_s11, 256  ;;  %p1631_p7 = scmp.lt.s32.totalorder %s75_s11, %s75_s11 }
  0x31   :  { %p1627_p6 = scmp.ne.s32.totalorder %s75_s11, %s1626_s0  ;;  %p1632_p8 = scmp.lt.s32.totalorder %s1626_s0, %s1626_s0 }
  0x33   :  { %p1633_p9 = por %p1632_p8, %p1631_p7 }
  0x35   :  { %p1634_p10 = pnand %p1633_p9, %p1627_p6 }
  0x37   :  { %1637 = shalt.err (!%p1634_p10)
}
  0x38   :  { %80 = dma.hbm_to_vmem [thread:$0]  %s2021_s5, 256, %s75_s11, [#allocation9], %s1692_s19, %s1692_s19, %s1693_s20  }
  0x39   :  { %s1646_s2 = scalar_lea.vmem %s89_s13, 256  ;;  %p1651_p12 = scmp.lt.s32.totalorder %s89_s13, %s89_s13 }
  0x3a   :  { %p1647_p11 = scmp.ne.s32.totalorder %s89_s13, %s1646_s2  ;;  %p1652_p13 = scmp.lt.s32.totalorder %s1646_s2, %s1646_s2 }
  0x3c   :  { %p1653_p0 = por %p1652_p13, %p1651_p12 }
  0x3e   :  { %p1654_p1 = pnand %p1653_p0, %p1647_p11 }
  0x40   :  { %1657 = shalt.err (!%p1654_p1)
}
  0x41   :  { %94 = dma.hbm_to_vmem [thread:$0]  %s2023_s7, 256, %s89_s13, [#allocation12], %s1692_s19, %s1692_s19, %s1693_s20  }
  0x42   :  { %1678 = dma.done.wait [#allocation3], 256  }
  0x43   :  { %1679 = vsyncadd [#allocation3], 4294967040 }
  0x44   :  { %1680 = dma.done.wait [#allocation6], 512  }
  0x45   :  { %1681 = vsyncadd [#allocation6], 4294966784 }
  0x46   :  { %1682 = dma.done.wait [#allocation9], 512  }
  0x47   :  { %1683 = vsyncadd [#allocation9], 4294966784 }
  0x48   :  { %1684 = dma.done.wait [#allocation12], 256  }
  0x49   :  { %1685 = vsyncadd [#allocation12], 4294967040  ;;  %v1698_v0 = vmov 0.0   ;;  %vm1699_vm0 = vmmov 0   ;;  %v1500_v1 = vld [vmem:[#allocation10 + $0x8] sm:$0xff]   ;;  %v1501_v2 = vld [vmem:[#allocation8 + $0x8] sm:$0xff]  }
  0x4a   :  { %1370 = vmatprep.subr.bf16.mxu1 %v1698_v0  ;;  %1362 = vmatprep.subr.bf16.mxu0 %v1698_v0  ;;  %v1502_v3 = vld [vmem:[#allocation10] sm:$0xff]   ;;  %v1503_v4 = vld [vmem:[#allocation8] sm:$0xff]   ;;  %v117_v6 = vld [vmem:[#allocation2 + $0x8] sm:$0xff]  ;;  %vm148_vm1 = vcmask 261120   ;;  %vm334_vm2 = vcmask 64512   ;;  %vm458_vm3 = vcmask 1043456  }
  0x4b   :  { %1374 = vmatprep.mubr.msk.bf16.mxu1 %vm1699_vm0, %v1698_v0  ;;  %1366 = vmatprep.mubr.msk.bf16.mxu0 %vm1699_vm0, %v1698_v0  ;;  %v116_v5 = vld [vmem:[#allocation2] sm:$0xff]  ;;  %v1504_v8 = vld [vmem:[#allocation11 + $0x8] sm:$0xff]   ;;  %v1505_v9 = vld [vmem:[#allocation11] sm:$0xff]   ;;  %s1702_s22 = smov 104   ;;  %s1703_s23 = smov 16   ;;  %vm1255_vm6 = vcmask 195584  }
  0x4c   :  { %1371 = vmatpush3.bf16.msra.mxu1 %v1500_v1  ;;  %1363 = vmatpush3.bf16.msra.mxu0 %v1501_v2  ;;  %v1320_v7 = vpack.c.bf16 %v117_v6, %v116_v5  ;;  %v1294_v10 = vld [vmem:[%s2022_s6] ss:$0 sm:$0xff]  ;;  %v320_v38 = vld [vmem:[#allocation5] sm:$0xff]  ;;  %v321_v40 = vld [vmem:[#allocation5 + $0x8] sm:$0xff]  ;;  %s1701_s6 = smov 112   ;;  %s1704_s24 = smov 24  }
  0x4d   :  { %1372 = vmatprep.subr.bf16.mxu1 %v1698_v0  ;;  %1364 = vmatprep.subr.bf16.mxu0 %v1698_v0  ;;  %v1289_v15 = vld [vmem:[%s2020_s4] ss:$0 sm:$0xff]  ;;  %s1700_s4 = smov 120   ;;  %vm322_vm4 = vcmp.gt.f32.partialorder %v320_v38, 0.0  ;;  %v329_v42 = vld [vmem:[#allocation7 + $0x8] sm:$0xff]  ;;  %vm323_vm5 = vcmp.gt.f32.partialorder %v321_v40, 0.0 }
  0x4e   :  { %v328_v39 = vld [vmem:[#allocation7] sm:$0xff]  ;;  %v1854_v43 = vsel %vm322_vm4, 1.0, %v1698_v0  ;;  %v331_v46 = vadd.f32 -9e+15, %v329_v42  ;;  %v1860_v49 = vsel %vm323_vm5, 1.0, %v1698_v0  ;;  %vm1252_vm7 = vcmask 130048  }
  0x4f   :  { %v330_v41 = vadd.f32 -9e+15, %v328_v39  ;;  %s1705_s26 = smov [#allocation13]  }
  0x50   :  { %1373 = vmatpush3.bf16.msra.mxu1 %v1502_v3  ;;  %1365 = vmatpush3.bf16.msra.mxu0 %v1503_v4  ;;  %v1863_v53 = vsel %vm323_vm5, %v329_v42, %v331_v46  ;;  %s1274_s27 = sshll.u32 %s1705_s26, 4  ;;  %s1275_s27 = int_to_ptr.vmem [resolvable:$true] %s1274_s27 }
  0x51   :  { %1386 = vmatprep.subr.bf16.mxu1 %v1698_v0  ;;  %1378 = vmatprep.subr.bf16.mxu0 %v1698_v0  ;;  %v1856_v45 = vsel %vm322_vm4, %v328_v39, %v330_v41  ;;  %p1663_p3 = scmp.lt.s32.totalorder %s1275_s27, %s1275_s27 }
  0x53   :  { %1375 = vmatmul.mubr.msk.bf16.vlgmr.msra.gmra.mxu1 %vm148_vm1, %v1320_v7  ;;  %1367 = vmatmul.mubr.msk.bf16.vlgmr.msra.gmra.mxu0 %vm148_vm1, %v1320_v7 }
  0x54   :  { %1388 = vmatprep.mubr.msk.bf16.mxu1 %vm1699_vm0, %v1698_v0  ;;  %1379 = vmatpush3.bf16.msra.mxu0 %v1504_v8 }
  0x55   :  { %1382 = vmatprep.mubr.msk.bf16.mxu0 %vm1699_vm0, %v1698_v0  ;;  %1380 = vmatprep.subr.bf16.mxu0 %v1698_v0 }
  0x58   :  { %1381 = vmatpush3.bf16.msra.mxu0 %v1505_v9 }
  0x59   :  { %1392 = vmatprep.subr.bf16.mxu0 %v1698_v0 }
  0x5b   :  { %1383 = vmatmul.mubr.msk.bf16.vlgmr.msra.gmra.mxu0 %vm148_vm1, %v1320_v7 }
  0x5c   :  { %1394 = vmatprep.mubr.msk.bf16.mxu0 %vm1699_vm0, %v1698_v0 }
 0x113   :  { %v252_v11 = vpop.f32.mrf.mxu1  ;;  %v186_v13 = vpop.f32.mrf.mxu0 }
 0x114   :  { %v253_v12 = vadd.f32 %v1294_v10, %v252_v11  ;;  %v187_v19 = vadd.f32 %v1289_v15, %v186_v13 }
 0x115   :  { %v1376_v14 = vpop.f32.mrf.mxu1  ;;  %v1368_v17 = vpop.f32.mrf.mxu0 }
 0x116   :  { %v1819_v16 = vpack.c.bf16 %v253_v12, %v253_v12  ;;  %v1826_v26 = vpack.c.bf16 %v187_v19, %v187_v19 }
 0x117   :  { %v255_v18 = vpop.f32.mrf.mxu1  ;;  %v189_v22 = vpop.f32.mrf.mxu0 }
 0x118   :  { %v256_v20 = vadd.f32 %v1294_v10, %v255_v18  ;;  %v339_v21 = vsel %vm334_vm2, %v1819_v16, 0  ;;  %v190_v28 = vadd.f32 %v1289_v15, %v189_v22 }
 0x119   :  { %v1377_v23 = vpop.f32.mrf.mxu1  ;;  %1387 = vmatpush3.bf16.xpose.msra.mxu1 %v339_v21  ;;  %v1369_v25 = vpop.f32.mrf.mxu0 }
 0x11a   :  { %v1823_v24 = vpack.c.bf16 %v256_v20, %v256_v20  ;;  %1398 = vmatprep.subr.bf16.mxu1 %v1698_v0  ;;  %v1837_v29 = vpack.c.bf16 %v190_v28, %v190_v28 }
 0x11b   :  { %v311_v30 = vpop.f32.mrf.mxu0 }
 0x11c   :  { %604 = vrot.lane.b32.xlu1 %v1823_v24, %s1700_s4  ;;  %v385_v27 = vsel %vm334_vm2, %v1823_v24, 0  ;;  %v1843_v33 = vpack.c.bf16 %v311_v30, %v311_v30 }
 0x11d   :  { %1393 = vmatpush3.bf16.xpose.msra.mxu0 %v385_v27  ;;  %v1384_v31 = vpop.f32.mrf.mxu0 }
 0x11e   :  { %1404 = vmatprep.subr.bf16.mxu0 %v1698_v0  ;;  %v460_v36 = vsel %vm458_vm3, %v1843_v33, 0 }
 0x11f   :  { %v314_v32 = vpop.f32.mrf.mxu0 }
 0x120   :  { %1389 = vmatmul.mubr.msk.bf16.vlgmr.msra.gmra.mxu1 %vm334_vm2, %v1826_v26  ;;  %v1845_v34 = vpack.c.bf16 %v314_v32, %v314_v32 }
 0x121   :  { %1400 = vmatprep.mubr.msk.bf16.mxu1 %vm1699_vm0, %v1698_v0  ;;  %v1385_v35 = vpop.f32.mrf.mxu0  ;;  %1399 = vmatpush3.bf16.msra.mxu1 %v460_v36 }
 0x122   :  { %v506_v37 = vsel %vm458_vm3, %v1845_v34, 0  ;;  %1410 = vmatprep.subr.bf16.mxu1 %v1698_v0 }
 0x124   :  { %1395 = vmatmul.mubr.msk.bf16.vlgmr.msra.gmra.mxu0 %vm334_vm2, %v1837_v29 }
 0x125   :  { %1406 = vmatprep.mubr.msk.bf16.mxu0 %vm1699_vm0, %v1698_v0  ;;  %1405 = vmatpush3.bf16.msra.mxu0 %v506_v37 }
 0x126   :  { %1416 = vmatprep.subr.bf16.mxu0 %v1698_v0 }
 0x18e   :  { %v605_v9 = vpop.permute.xlu1 %604 }
 0x18f   :  { %v610_v21 = vsel %vm334_vm2, %v605_v9, 0 }
 0x1e0   :  { %v375_v44 = vpop.f32.mrf.mxu1 }
 0x1e1   :  { %v427_v47 = vmul.f32 %v1854_v43, %v375_v44 }
 0x1e2   :  { %v1390_v48 = vpop.f32.mrf.mxu1 }
 0x1e3   :  { %v429_v50 = vadd.f32 %v427_v47, %v1856_v45 }
 0x1e4   :  { %v378_v51 = vpop.f32.mrf.mxu1  ;;  %v421_v52 = vpop.f32.mrf.mxu0 }
 0x1e5   :  { %v428_v54 = vmul.f32 %v1860_v49, %v421_v52  ;;  %v431_v55 = vsel %vm334_vm2, %v429_v50, -inf }
 0x1e6   :  { %432 = vmax.xlane.f32.xlu0 %v431_v55  ;;  %v1391_v56 = vpop.f32.mrf.mxu1  ;;  %v1396_v57 = vpop.f32.mrf.mxu0 }
 0x1e7   :  { %v430_v58 = vadd.f32 %v428_v54, %v1863_v53 }
 0x1e8   :  { %v424_v59 = vpop.f32.mrf.mxu0 }
 0x1e9   :  { %v434_v60 = vsel %vm334_vm2, %v430_v58, -inf }
 0x1ea   :  { %435 = vmax.xlane.f32.xlu0 %v434_v60  ;;  %v1397_v61 = vpop.f32.mrf.mxu0 }
 0x200   :  { %552 = vrot.lane.b32.xlu0 %v1819_v16, %s1700_s4 }
 0x26f   :  { %v433_v62 = vpop.xlane.xlu0 %432 }
 0x270   :  { %v437_v63 = vsub.f32 %v429_v50, %v433_v62 }
 0x272   :  { %v439_v1 = vmul.f32 1.442695, %v437_v63 }
 0x273   :  { %v436_v2 = vpop.xlane.xlu0 %435 }
 0x274   :  { %1506 = vpow2.f32 %v439_v1  ;;  %v438_v3 = vsub.f32 %v430_v58, %v436_v2 }
 0x276   :  { %v441_v4 = vmul.f32 1.442695, %v438_v3 }
 0x277   :  { %v553_v14 = vpop.permute.xlu0 %552 }
 0x278   :  { %1508 = vpow2.f32 %v441_v4  ;;  %v558_v18 = vsel %vm334_vm2, %v553_v14, 0 }
 0x281   :  { %v1507_v5 = vpop.eup %1506 }
 0x282   :  { %v443_v6 = vsel %vm334_vm2, %v1507_v5, 0.0 }
 0x283   :  { %444 = vadd.xlane.f32.xlu1 %v443_v6 }
 0x285   :  { %v1509_v7 = vpop.eup %1508 }
 0x286   :  { %v446_v8 = vsel %vm334_vm2, %v1509_v7, 0.0 }
 0x287   :  { %447 = vadd.xlane.f32.xlu1 %v446_v8 }
 0x298   :  { %549 = vrot.lane.b32.xlu1 %v1826_v26, %s1700_s4 }
 0x29c   :  { %601 = vrot.lane.b32.xlu1 %v1837_v29, %s1700_s4 }
 0x30c   :  { %v445_v10 = vpop.xlane.xlu1 %444 }
 0x30d   :  { %1510 = vrcp.f32 %v445_v10 }
 0x310   :  { %v448_v11 = vpop.xlane.xlu1 %447 }
 0x311   :  { %1512 = vrcp.f32 %v448_v11 }
 0x314   :  { %v550_v22 = vpop.permute.xlu1 %549 }
 0x318   :  { %v602_v23 = vpop.permute.xlu1 %601 }
 0x31a   :  { %v1511_v12 = vpop.eup %1510 }
 0x31b   :  { %v451_v13 = vmul.f32 %v1511_v12, %v1507_v5 }
 0x31d   :  { %v453_v15 = vpack.c.bf16 %v451_v13, %v451_v13 }
 0x31e   :  { %v1513_v17 = vpop.eup %1512 }
 0x31f   :  { %1401 = vmatmul.mubr.msk.bf16.vlgmr.msra.gmra.mxu1 %vm334_vm2, %v453_v15  ;;  %v452_v19 = vmul.f32 %v1513_v17, %v1509_v7 }
 0x320   :  { %1411 = vmatpush3.bf16.xpose.msra.mxu1 %v558_v18  ;;  %1412 = vmatprep.mubr.msk.bf16.mxu1 %vm1699_vm0, %v1698_v0 }
 0x321   :  { %v454_v20 = vpack.c.bf16 %v452_v19, %v452_v19  ;;  %1422 = vmatprep.subr.bf16.mxu1 %v1698_v0 }
 0x323   :  { %1407 = vmatmul.mubr.msk.bf16.vlgmr.msra.gmra.mxu0 %vm334_vm2, %v454_v20 }
 0x324   :  { %1417 = vmatpush3.bf16.xpose.msra.mxu0 %v610_v21  ;;  %1418 = vmatprep.mubr.msk.bf16.mxu0 %vm1699_vm0, %v1698_v0 }
 0x325   :  { %1428 = vmatprep.subr.bf16.mxu0 %v1698_v0 }
 0x327   :  { %1413 = vmatmul.mubr.msk.bf16.vlgmr.msra.gmra.mxu1 %vm334_vm2, %v550_v22 }
 0x328   :  { %1424 = vmatprep.mubr.msk.bf16.mxu1 %vm1699_vm0, %v1698_v0 }
 0x32b   :  { %1419 = vmatmul.mubr.msk.bf16.vlgmr.msra.gmra.mxu0 %vm334_vm2, %v602_v23 }
 0x32c   :  { %1430 = vmatprep.mubr.msk.bf16.mxu0 %vm1699_vm0, %v1698_v0 }
 0x3df   :  { %v1893_v25 = vpop.f32.mrf.mxu1 }
 0x3e1   :  { %v1402_v27 = vpop.f32.mrf.mxu1 }
 0x3e3   :  { %v499_v28 = vpop.f32.mrf.mxu1  ;;  %v1895_v30 = vpop.f32.mrf.mxu0 }
 0x3e5   :  { %v1403_v31 = vpop.f32.mrf.mxu1  ;;  %v1408_v32 = vpop.f32.mrf.mxu0 }
 0x3e7   :  { %v545_v35 = vpop.f32.mrf.mxu0  ;;  %v594_v36 = vpop.f32.mrf.mxu1 }
 0x3e8   :  { %v652_v37 = vmul.f32 %v1854_v43, %v594_v36 }
 0x3e9   :  { %v1409_v38 = vpop.f32.mrf.mxu0  ;;  %v1414_v39 = vpop.f32.mrf.mxu1 }
 0x3ea   :  { %v654_v40 = vadd.f32 %v652_v37, %v1856_v45 }
 0x3eb   :  { %v597_v41 = vpop.f32.mrf.mxu1  ;;  %v646_v42 = vpop.f32.mrf.mxu0 }
 0x3ec   :  { %v653_v44 = vmul.f32 %v1860_v49, %v646_v42  ;;  %v656_v46 = vsel %vm334_vm2, %v654_v40, -inf }
 0x3ed   :  { %657 = vmax.xlane.f32.xlu0 %v656_v46  ;;  %v1415_v47 = vpop.f32.mrf.mxu1  ;;  %v1420_v48 = vpop.f32.mrf.mxu0 }
 0x3ee   :  { %v655_v50 = vadd.f32 %v653_v44, %v1863_v53 }
 0x3ef   :  { %v649_v51 = vpop.f32.mrf.mxu0 }
 0x3f0   :  { %v659_v52 = vsel %vm334_vm2, %v655_v50, -inf }
 0x3f1   :  { %660 = vmax.xlane.f32.xlu1 %v659_v52  ;;  %v1421_v54 = vpop.f32.mrf.mxu0 }
 0x402   :  { %730 = vrot.lane.b32.xlu1 %v1845_v34, %s1700_s4 }
 0x406   :  { %780 = vrot.lane.b32.xlu1 %v1819_v16, %s1701_s6 }
 0x40a   :  { %830 = vrot.lane.b32.xlu1 %v1823_v24, %s1701_s6 }
 0x40e   :  { %828 = vrot.lane.b32.xlu1 %v1837_v29, %s1701_s6 }
 0x476   :  { %v658_v55 = vpop.xlane.xlu0 %657 }
 0x477   :  { %v662_v56 = vsub.f32 %v654_v40, %v658_v55 }
 0x479   :  { %v664_v57 = vmul.f32 1.442695, %v662_v56 }
 0x47a   :  { %v661_v58 = vpop.xlane.xlu1 %660 }
 0x47b   :  { %1514 = vpow2.f32 %v664_v57  ;;  %v663_v59 = vsub.f32 %v655_v50, %v661_v58 }
 0x47d   :  { %v666_v60 = vmul.f32 1.442695, %v663_v59 }
 0x47e   :  { %v731_v61 = vpop.permute.xlu1 %730 }
 0x47f   :  { %1516 = vpow2.f32 %v666_v60  ;;  %v736_v62 = vsel %vm458_vm3, %v731_v61, 0 }
 0x480   :  { %1429 = vmatpush3.bf16.msra.mxu0 %v736_v62 }
 0x481   :  { %1440 = vmatprep.subr.bf16.mxu0 %v1698_v0 }
 0x482   :  { %v781_v9 = vpop.permute.xlu1 %780 }
 0x483   :  { %v786_v13 = vsel %vm334_vm2, %v781_v9, 0 }
 0x486   :  { %v831_v15 = vpop.permute.xlu1 %830 }
 0x487   :  { %v836_v18 = vsel %vm334_vm2, %v831_v15, 0 }
 0x488   :  { %v1515_v63 = vpop.eup %1514 }
 0x489   :  { %v668_v1 = vsel %vm334_vm2, %v1515_v63, 0.0 }
 0x48a   :  { %669 = vadd.xlane.f32.xlu0 %v668_v1  ;;  %v829_v20 = vpop.permute.xlu1 %828 }
 0x48c   :  { %v1517_v2 = vpop.eup %1516 }
 0x48d   :  { %v671_v3 = vsel %vm334_vm2, %v1517_v2, 0.0 }
 0x48e   :  { %672 = vadd.xlane.f32.xlu0 %v671_v3 }
 0x4a4   :  { %681 = vrot.lane.b32.xlu0 %v1843_v33, %s1700_s4 }
 0x4a8   :  { %778 = vrot.lane.b32.xlu0 %v1826_v26, %s1701_s6 }
 0x513   :  { %v670_v4 = vpop.xlane.xlu0 %669 }
 0x514   :  { %1518 = vrcp.f32 %v670_v4 }
 0x517   :  { %v673_v5 = vpop.xlane.xlu0 %672 }
 0x518   :  { %1520 = vrcp.f32 %v673_v5 }
 0x51b   :  { %v682_v6 = vpop.permute.xlu0 %681 }
 0x51c   :  { %v687_v7 = vsel %vm458_vm3, %v682_v6, 0 }
 0x51d   :  { %1423 = vmatpush3.bf16.msra.mxu1 %v687_v7 }
 0x51e   :  { %1434 = vmatprep.subr.bf16.mxu1 %v1698_v0 }
 0x51f   :  { %v779_v19 = vpop.permute.xlu0 %778 }
 0x521   :  { %v1519_v8 = vpop.eup %1518 }
 0x522   :  { %v676_v10 = vmul.f32 %v1519_v8, %v1515_v63 }
 0x524   :  { %v678_v11 = vpack.c.bf16 %v676_v10, %v676_v10 }
 0x525   :  { %v1521_v12 = vpop.eup %1520 }
 0x526   :  { %1425 = vmatmul.mubr.msk.bf16.vlgmr.msra.gmra.mxu1 %vm334_vm2, %v678_v11  ;;  %v677_v14 = vmul.f32 %v1521_v12, %v1517_v2 }
 0x527   :  { %1435 = vmatpush3.bf16.xpose.msra.mxu1 %v786_v13  ;;  %1436 = vmatprep.mubr.msk.bf16.mxu1 %vm1699_vm0, %v1698_v0 }
 0x528   :  { %v679_v17 = vpack.c.bf16 %v677_v14, %v677_v14  ;;  %1446 = vmatprep.subr.bf16.mxu1 %v1698_v0 }
 0x52a   :  { %1431 = vmatmul.mubr.msk.bf16.vlgmr.msra.gmra.mxu0 %vm334_vm2, %v679_v17 }
 0x52b   :  { %1441 = vmatpush3.bf16.xpose.msra.mxu0 %v836_v18  ;;  %1442 = vmatprep.mubr.msk.bf16.mxu0 %vm1699_vm0, %v1698_v0 }
 0x52c   :  { %1452 = vmatprep.subr.bf16.mxu0 %v1698_v0 }
 0x52e   :  { %1437 = vmatmul.mubr.msk.bf16.vlgmr.msra.gmra.mxu1 %vm334_vm2, %v779_v19 }
 0x52f   :  { %1448 = vmatprep.mubr.msk.bf16.mxu1 %vm1699_vm0, %v1698_v0 }
 0x532   :  { %1443 = vmatmul.mubr.msk.bf16.vlgmr.msra.gmra.mxu0 %vm334_vm2, %v829_v20 }
 0x533   :  { %1454 = vmatprep.mubr.msk.bf16.mxu0 %vm1699_vm0, %v1698_v0 }
 0x5e6   :  { %v1937_v21 = vpop.f32.mrf.mxu1 }
 0x5e8   :  { %v1426_v22 = vpop.f32.mrf.mxu1 }
 0x5ea   :  { %v726_v23 = vpop.f32.mrf.mxu1  ;;  %v1939_v27 = vpop.f32.mrf.mxu0 }
 0x5ec   :  { %v1427_v28 = vpop.f32.mrf.mxu1  ;;  %v1432_v31 = vpop.f32.mrf.mxu0 }
 0x5ee   :  { %v775_v32 = vpop.f32.mrf.mxu0  ;;  %v822_v35 = vpop.f32.mrf.mxu1 }
 0x5ef   :  { %v878_v36 = vmul.f32 %v1854_v43, %v822_v35 }
 0x5f0   :  { %v1433_v37 = vpop.f32.mrf.mxu0  ;;  %v1438_v38 = vpop.f32.mrf.mxu1 }
 0x5f1   :  { %v880_v39 = vadd.f32 %v878_v36, %v1856_v45 }
 0x5f2   :  { %v825_v40 = vpop.f32.mrf.mxu1  ;;  %v872_v41 = vpop.f32.mrf.mxu0 }
 0x5f3   :  { %v879_v42 = vmul.f32 %v1860_v49, %v872_v41  ;;  %v882_v44 = vsel %vm334_vm2, %v880_v39, -inf }
 0x5f4   :  { %883 = vmax.xlane.f32.xlu0 %v882_v44  ;;  %v1439_v46 = vpop.f32.mrf.mxu1  ;;  %v1444_v47 = vpop.f32.mrf.mxu0 }
 0x5f5   :  { %v881_v48 = vadd.f32 %v879_v42, %v1863_v53 }
 0x5f6   :  { %v875_v50 = vpop.f32.mrf.mxu0 }
 0x5f7   :  { %v885_v51 = vsel %vm334_vm2, %v881_v48, -inf }
 0x5f8   :  { %886 = vmax.xlane.f32.xlu1 %v885_v51  ;;  %v1445_v52 = vpop.f32.mrf.mxu0 }
 0x609   :  { %954 = vrot.lane.b32.xlu1 %v1845_v34, %s1701_s6 }
 0x60d   :  { %1004 = vrot.lane.b32.xlu1 %v1819_v16, %s1702_s22 }
 0x611   :  { %1054 = vrot.lane.b32.xlu1 %v1823_v24, %s1702_s22 }
 0x615   :  { %1052 = vrot.lane.b32.xlu1 %v1837_v29, %s1702_s22 }
 0x67d   :  { %v884_v54 = vpop.xlane.xlu0 %883 }
 0x67e   :  { %v888_v55 = vsub.f32 %v880_v39, %v884_v54 }
 0x680   :  { %v890_v56 = vmul.f32 1.442695, %v888_v55 }
 0x681   :  { %v887_v57 = vpop.xlane.xlu1 %886 }
 0x682   :  { %1522 = vpow2.f32 %v890_v56  ;;  %v889_v58 = vsub.f32 %v881_v48, %v887_v57 }
 0x684   :  { %v892_v59 = vmul.f32 1.442695, %v889_v58 }
 0x685   :  { %v955_v60 = vpop.permute.xlu1 %954 }
 0x686   :  { %1524 = vpow2.f32 %v892_v59  ;;  %v960_v61 = vsel %vm458_vm3, %v955_v60, 0 }
 0x687   :  { %1453 = vmatpush3.bf16.msra.mxu0 %v960_v61 }
 0x688   :  { %1464 = vmatprep.subr.bf16.mxu0 %v1698_v0 }
 0x689   :  { %v1005_v5 = vpop.permute.xlu1 %1004 }
 0x68a   :  { %v1010_v9 = vsel %vm334_vm2, %v1005_v5, 0 }
 0x68d   :  { %v1055_v10 = vpop.permute.xlu1 %1054 }
 0x68e   :  { %v1060_v12 = vsel %vm334_vm2, %v1055_v10, 0 }
 0x68f   :  { %v1523_v16 = vpop.eup %1522 }
 0x690   :  { %v894_v24 = vsel %vm334_vm2, %v1523_v16, 0.0 }
 0x691   :  { %895 = vadd.xlane.f32.xlu0 %v894_v24  ;;  %v1053_v14 = vpop.permute.xlu1 %1052 }
 0x693   :  { %v1525_v62 = vpop.eup %1524 }
 0x694   :  { %v897_v29 = vsel %vm334_vm2, %v1525_v62, 0.0 }
 0x695   :  { %898 = vadd.xlane.f32.xlu0 %v897_v29 }
 0x6ab   :  { %906 = vrot.lane.b32.xlu0 %v1843_v33, %s1701_s6 }
 0x6af   :  { %1002 = vrot.lane.b32.xlu0 %v1826_v26, %s1702_s22 }
 0x71a   :  { %v896_v63 = vpop.xlane.xlu0 %895 }
 0x71b   :  { %1526 = vrcp.f32 %v896_v63 }
 0x71e   :  { %v899_v1 = vpop.xlane.xlu0 %898 }
 0x71f   :  { %1528 = vrcp.f32 %v899_v1 }
 0x722   :  { %v907_v2 = vpop.permute.xlu0 %906 }
 0x723   :  { %v912_v3 = vsel %vm458_vm3, %v907_v2, 0 }
 0x724   :  { %1447 = vmatpush3.bf16.msra.mxu1 %v912_v3 }
 0x725   :  { %1458 = vmatprep.subr.bf16.mxu1 %v1698_v0 }
 0x726   :  { %v1003_v13 = vpop.permute.xlu0 %1002 }
 0x728   :  { %v1527_v4 = vpop.eup %1526 }
 0x729   :  { %v902_v6 = vmul.f32 %v1527_v4, %v1523_v16 }
 0x72b   :  { %v904_v7 = vpack.c.bf16 %v902_v6, %v902_v6 }
 0x72c   :  { %v1529_v8 = vpop.eup %1528 }
 0x72d   :  { %1449 = vmatmul.mubr.msk.bf16.vlgmr.msra.gmra.mxu1 %vm334_vm2, %v904_v7  ;;  %v903_v26 = vmul.f32 %v1529_v8, %v1525_v62 }
 0x72e   :  { %1459 = vmatpush3.bf16.xpose.msra.mxu1 %v1010_v9  ;;  %1460 = vmatprep.mubr.msk.bf16.mxu1 %vm1699_vm0, %v1698_v0 }
 0x72f   :  { %v905_v11 = vpack.c.bf16 %v903_v26, %v903_v26  ;;  %1470 = vmatprep.subr.bf16.mxu1 %v1698_v0  ;;  %v1319_v26 = vld [vmem:[%s2024_s8] ss:$0 sm:$0xff]  ;;  %s1658_s8 = scalar_lea.vmem %s1275_s27, 256 }
 0x730   :  { %p1659_p2 = scmp.ne.s32.totalorder %s1275_s27, %s1658_s8  ;;  %p1664_p4 = scmp.lt.s32.totalorder %s1658_s8, %s1658_s8 }
 0x731   :  { %1455 = vmatmul.mubr.msk.bf16.vlgmr.msra.gmra.mxu0 %vm334_vm2, %v905_v11 }
 0x732   :  { %1465 = vmatpush3.bf16.xpose.msra.mxu0 %v1060_v12  ;;  %1466 = vmatprep.mubr.msk.bf16.mxu0 %vm1699_vm0, %v1698_v0  ;;  %p1665_p5 = por %p1664_p4, %p1663_p3 }
 0x733   :  { %1476 = vmatprep.subr.bf16.mxu0 %v1698_v0 }
 0x734   :  { %p1666_p6 = pnand %p1665_p5, %p1659_p2 }
 0x735   :  { %1461 = vmatmul.mubr.msk.bf16.vlgmr.msra.gmra.mxu1 %vm334_vm2, %v1003_v13 }
 0x736   :  { %1472 = vmatprep.mubr.msk.bf16.mxu1 %vm1699_vm0, %v1698_v0 }
 0x739   :  { %1467 = vmatmul.mubr.msk.bf16.vlgmr.msra.gmra.mxu0 %vm334_vm2, %v1053_v14 }
 0x73a   :  { %1478 = vmatprep.mubr.msk.bf16.mxu0 %vm1699_vm0, %v1698_v0 }
 0x7ed   :  { %v948_v15 = vpop.f32.mrf.mxu1 }
 0x7ef   :  { %v1450_v17 = vpop.f32.mrf.mxu1 }
 0x7f1   :  { %v951_v18 = vpop.f32.mrf.mxu1  ;;  %v996_v19 = vpop.f32.mrf.mxu0 }
 0x7f3   :  { %v1451_v20 = vpop.f32.mrf.mxu1  ;;  %v1456_v22 = vpop.f32.mrf.mxu0 }
 0x7f5   :  { %v999_v23 = vpop.f32.mrf.mxu0  ;;  %v1046_v28 = vpop.f32.mrf.mxu1 }
 0x7f6   :  { %v1102_v31 = vmul.f32 %v1854_v43, %v1046_v28 }
 0x7f7   :  { %v1457_v32 = vpop.f32.mrf.mxu0  ;;  %v1462_v35 = vpop.f32.mrf.mxu1 }
 0x7f8   :  { %v1104_v36 = vadd.f32 %v1102_v31, %v1856_v45 }
 0x7f9   :  { %v1049_v37 = vpop.f32.mrf.mxu1  ;;  %v1096_v38 = vpop.f32.mrf.mxu0 }
 0x7fa   :  { %v1103_v39 = vmul.f32 %v1860_v49, %v1096_v38  ;;  %v1106_v0 = vsel %vm334_vm2, %v1104_v36, -inf }
 0x7fb   :  { %1107 = vmax.xlane.f32.xlu0 %v1106_v0  ;;  %v1463_v40 = vpop.f32.mrf.mxu1  ;;  %v1468_v41 = vpop.f32.mrf.mxu0 }
 0x7fc   :  { %v1105_v42 = vadd.f32 %v1103_v39, %v1863_v53 }
 0x7fd   :  { %v1099_v44 = vpop.f32.mrf.mxu0 }
 0x7fe   :  { %v1109_v46 = vsel %vm334_vm2, %v1105_v42, -inf }
 0x7ff   :  { %1110 = vmax.xlane.f32.xlu1 %v1109_v46  ;;  %v1469_v43 = vpop.f32.mrf.mxu0 }
 0x810   :  { %1178 = vrot.lane.b32.xlu1 %v1845_v34, %s1702_s22 }
 0x814   :  { %1228 = vrot.lane.b32.xlu1 %v1937_v21, %s1691_s15 }
 0x818   :  { %1230 = vrot.lane.b32.xlu1 %v1939_v27, %s1691_s15 }
 0x81c   :  { %1238 = vrot.lane.b32.xlu1 %v996_v19, %s1703_s23 }
 0x884   :  { %v1108_v45 = vpop.xlane.xlu0 %1107 }
 0x885   :  { %v1112_v49 = vsub.f32 %v1104_v36, %v1108_v45 }
 0x887   :  { %v1114_v47 = vmul.f32 1.442695, %v1112_v49 }
 0x888   :  { %v1111_v53 = vpop.xlane.xlu1 %1110 }
 0x889   :  { %1530 = vpow2.f32 %v1114_v47  ;;  %v1113_v48 = vsub.f32 %v1105_v42, %v1111_v53 }
 0x88b   :  { %v1116_v50 = vmul.f32 1.442695, %v1113_v48 }
 0x88c   :  { %v1179_v51 = vpop.permute.xlu1 %1178 }
 0x88d   :  { %1532 = vpow2.f32 %v1116_v50  ;;  %v1184_v52 = vsel %vm458_vm3, %v1179_v51, 0 }
 0x88e   :  { %1477 = vmatpush3.bf16.msra.mxu0 %v1184_v52 }
 0x890   :  { %v1229_v6 = vpop.permute.xlu1 %1228 }
 0x891   :  { %v1250_v9 = vsel %vm334_vm2, %v1893_v25, %v1229_v6 }
 0x894   :  { %v1231_v7 = vpop.permute.xlu1 %1230 }
 0x896   :  { %v1531_v34 = vpop.eup %1530 }
 0x897   :  { %v1118_v21 = vsel %vm334_vm2, %v1531_v34, 0.0 }
 0x898   :  { %1119 = vadd.xlane.f32.xlu0 %v1118_v21  ;;  %v1239_v10 = vpop.permute.xlu1 %1238 }
 0x89a   :  { %v1533_v54 = vpop.eup %1532 }
 0x89b   :  { %v1121_v27 = vsel %vm334_vm2, %v1533_v54, 0.0 }
 0x89c   :  { %1122 = vadd.xlane.f32.xlu0 %v1121_v27 }
 0x8b2   :  { %1130 = vrot.lane.b32.xlu0 %v1843_v33, %s1702_s22 }
 0x8b6   :  { %1236 = vrot.lane.b32.xlu0 %v948_v15, %s1703_s23  ;;  %v1251_v15 = vsel %vm334_vm2, %v1895_v30, %v1231_v7 }
 0x8b7   :  { %v1254_v17 = vsel %vm1252_vm7, %v1251_v15, %v1239_v10 }
 0x921   :  { %v1120_v55 = vpop.xlane.xlu0 %1119 }
 0x922   :  { %1534 = vrcp.f32 %v1120_v55 }
 0x925   :  { %v1123_v56 = vpop.xlane.xlu0 %1122 }
 0x926   :  { %1536 = vrcp.f32 %v1123_v56 }
 0x929   :  { %v1131_v57 = vpop.permute.xlu0 %1130 }
 0x92a   :  { %v1136_v58 = vsel %vm458_vm3, %v1131_v57, 0 }
 0x92b   :  { %1471 = vmatpush3.bf16.msra.mxu1 %v1136_v58 }
 0x92d   :  { %v1237_v8 = vpop.permute.xlu0 %1236 }
 0x92e   :  { %v1253_v11 = vsel %vm1252_vm7, %v1250_v9, %v1237_v8 }
 0x92f   :  { %v1535_v59 = vpop.eup %1534 }
 0x930   :  { %v1126_v60 = vmul.f32 %v1535_v59, %v1531_v34 }
 0x932   :  { %v1128_v61 = vpack.c.bf16 %v1126_v60, %v1126_v60 }
 0x933   :  { %v1537_v16 = vpop.eup %1536 }
 0x934   :  { %1473 = vmatmul.mubr.msk.bf16.vlgmr.msra.gmra.mxu1 %vm334_vm2, %v1128_v61  ;;  %v1127_v24 = vmul.f32 %v1537_v16, %v1533_v54 }
 0x936   :  { %v1129_v62 = vpack.c.bf16 %v1127_v24, %v1127_v24 }
 0x938   :  { %1479 = vmatmul.mubr.msk.bf16.vlgmr.msra.gmra.mxu0 %vm334_vm2, %v1129_v62 }
 0x9f4   :  { %v1172_v33 = vpop.f32.mrf.mxu1 }
 0x9f5   :  { %1244 = vrot.lane.b32.xlu0 %v1172_v33, %s1704_s24 }
 0x9f6   :  { %v1474_v29 = vpop.f32.mrf.mxu1 }
 0x9f8   :  { %v1175_v63 = vpop.f32.mrf.mxu1  ;;  %v1220_v1 = vpop.f32.mrf.mxu0 }
 0x9f9   :  { %1246 = vrot.lane.b32.xlu1 %v1220_v1, %s1704_s24 }
 0x9fa   :  { %v1475_v2 = vpop.f32.mrf.mxu1  ;;  %v1480_v3 = vpop.f32.mrf.mxu0 }
 0x9fc   :  { %v1223_v4 = vpop.f32.mrf.mxu0 }
 0x9fe   :  { %v1481_v5 = vpop.f32.mrf.mxu0 }
 0xa67   :  { %v1245_v12 = vpop.permute.xlu0 %1244 }
 0xa68   :  { %v1256_v13 = vsel %vm1255_vm6, %v1253_v11, %v1245_v12 }
 0xa69   :  { %v1265_v14 = vadd.f32 %v1319_v26, %v1256_v13 }
 0xa6b   :  { %1267 = vst.msk [vmem:[#allocation13] sm:$0xff] %vm148_vm1, %v1265_v14  ;;  %v1247_v18 = vpop.permute.xlu1 %1246 }
 0xa6c   :  { %v1257_v25 = vsel %vm1255_vm6, %v1254_v17, %v1247_v18 }
 0xa6d   :  { %v1266_v19 = vadd.f32 %v1319_v26, %v1257_v25 }
 0xa6f   :  { %1268 = vst.msk [vmem:[#allocation13 + $0x8] sm:$0xff] %vm148_vm1, %v1266_v19 }
 0xa70   :  { %1669 = shalt.err (!%p1666_p6)
}
 0xa71   :  { %1280 = dma.vmem_to_hbm [thread:$0]  %s1275_s27, 256, %s2025_s9, [#allocation4], %s1690_s14, %s1690_s14, %s1691_s15  }
 0xa72   :  { %1686 = dma.done.wait [#allocation4], 256  }
 0xa73   :  { %1687 = vsyncadd [#allocation4], 4294967040 }
 0xa74   :  { %1284 = vsyncpa [#allocation3], 1 }
 0xa75   :  { %1285 = vsyncpa [#allocation6], 1 }
 0xa76   :  { %1286 = vsyncpa [#allocation9], 1 }
 0xa77   :  { %1287 = vsyncpa [#allocation12], 1 }
 0xa78   :  { %1288 = vsyncpa [#allocation4], 1 }

</bundles_post_ra>
